<compile_context>
chip_gen: v7x
topology: tpu7x:2x2x1
jax: 0.10.0
libtpu: 0.0.40
codegen_flags: <defaults>
</compile_context>

<pallas_src>
import jax
import jax.numpy as jnp
from jax.experimental import pallas as pl
from jax.experimental.pallas import tpu as pltpu

LANES = 128
TARGET_BLOCK_BYTES = 4 * 1024 * 1024      # per-block target (input or output)
VMEM_LIMIT_BYTES = 32 * 1024 * 1024       # 4 x 4 MiB double-buffered blocks + slack
MIN_GRID_STEPS = 4                        # pipelining + v7x 2-TC sharding
SMALL_N = 16 * 1024                       # below this, plain XLA wins


def _swish_kernel(x_ref, o_ref):
    x = x_ref[...].astype(jnp.float32)            # f32: mandatory on v5e VPU/EUP
    # sigmoid(x) = 0.5 * (tanh(x/2) + 1): exactly one EUP transcendental/elem.
    sig = 0.5 * (jnp.tanh(0.5 * x) + 1.0)
    o_ref[...] = (x * sig).astype(o_ref.dtype)


def _round_up(v, m):
    return ((v + m - 1) // m) * m


def _native_sublanes(dtype):
    # 8 for 4-byte, 16 for 2-byte, 32 for 1-byte dtypes (sub-32-bit packing).
    return max(8, 32 // jnp.dtype(dtype).itemsize)


_CORE_PARALLEL_OK = None


def _grid_semantics():
    """CORE_PARALLEL when it lowers on this chip (v7x: shard the grid axis
    across both TensorCores), otherwise plain "parallel"."""
    global _CORE_PARALLEL_OK
    core_parallel = getattr(pltpu, "CORE_PARALLEL", None)
    if core_parallel is None:
        return ("parallel",)
    if _CORE_PARALLEL_OK is None:
        def _probe(x_ref, o_ref):
            o_ref[...] = x_ref[...]
        try:
            # Odd grid on purpose: if CORE_PARALLEL cannot handle uneven splits
            # it is rejected here and we fall back for every shape.
            fn = pl.pallas_call(
                _probe,
                out_shape=jax.ShapeDtypeStruct((24, LANES), jnp.float32),
                grid_spec=pltpu.PrefetchScalarGridSpec(
                    num_scalar_prefetch=0,
                    grid=(3,),
                    in_specs=[pl.BlockSpec((8, LANES), lambda i: (i, 0))],
                    out_specs=pl.BlockSpec((8, LANES), lambda i: (i, 0)),
                ),
                compiler_params=pltpu.CompilerParams(
                    dimension_semantics=(core_parallel,)),
            )
            jax.block_until_ready(fn(jnp.zeros((24, LANES), jnp.float32)))
            _CORE_PARALLEL_OK = True
        except Exception:          # lowering/compile rejection on this chip
            _CORE_PARALLEL_OK = False
    return (core_parallel,) if _CORE_PARALLEL_OK else ("parallel",)


def _pick_tile_rows(rows, sublane, itemsize):
    """Largest row-tile <= ~4 MiB keeping >= MIN_GRID_STEPS steps, rounded to
    the dtype's native sublane count, with a best-effort even step count."""
    max_rows = max(sublane,
                   (TARGET_BLOCK_BYTES // (LANES * itemsize)) // sublane * sublane)
    tr = min(max_rows, _round_up(pl.cdiv(rows, MIN_GRID_STEPS), sublane))
    tr = max(tr, sublane)
    steps = pl.cdiv(rows, tr)
    # Even step count keeps v7x's two TensorCores load-balanced.
    if steps > 1 and steps % 2 == 1:
        tr_alt = _round_up(pl.cdiv(rows, steps + 1), sublane)
        if sublane <= tr_alt <= max_rows and pl.cdiv(rows, tr_alt) % 2 == 0:
            tr = tr_alt
    return tr


def swish(x):
    """Elementwise swish: x * sigmoid(x). Floating-point inputs only."""
    if not jnp.issubdtype(x.dtype, jnp.floating):
        raise TypeError(f"swish expects a floating dtype, got {x.dtype}")

    orig_shape = x.shape
    n = x.size
    if n == 0:
        return x
    if n < SMALL_N:
        # Tiny-input fast path: kernel dispatch would dominate; XLA fuses this.
        return x * jax.nn.sigmoid(x)

    itemsize = jnp.dtype(x.dtype).itemsize
    sublane = _native_sublanes(x.dtype)

    # ---- lane-dense 2D view with minimal extra HBM traffic -----------------
    if n % LANES == 0:
        rows = n // LANES
        x2d = x.reshape(rows, LANES)          # free reshape, no pad, no slice
        padded = False
    else:
        # TODO(synk): ragged path still pays jnp.pad + tail slice (2 extra HBM
        # passes); acceptable because large ragged activation shapes are rare.
        rows = pl.cdiv(n, LANES)
        x2d = jnp.pad(x.reshape(-1), (0, rows * LANES - n)).reshape(rows, LANES)
        padded = True

    tr = _pick_tile_rows(rows, sublane, itemsize)
    grid = (pl.cdiv(rows, tr),)               # partial last block clipped by Pallas

    n_tot = rows * LANES
    out2d = pl.pallas_call(
        _swish_kernel,
        out_shape=jax.ShapeDtypeStruct((rows, LANES), x.dtype),
        grid_spec=pltpu.PrefetchScalarGridSpec(
            num_scalar_prefetch=0,
            grid=grid,
            in_specs=[pl.BlockSpec((tr, LANES), lambda i: (i, 0))],
            out_specs=pl.BlockSpec((tr, LANES), lambda i: (i, 0)),
        ),
        compiler_params=pltpu.CompilerParams(
            dimension_semantics=_grid_semantics(),
            vmem_limit_bytes=VMEM_LIMIT_BYTES,
        ),
        cost_estimate=pl.CostEstimate(
            flops=3 * n_tot,
            transcendentals=n_tot,
            bytes_accessed=2 * n_tot * itemsize,
        ),
    )(x2d)

    if padded:
        return out2d.reshape(-1)[:n].reshape(orig_shape)
    return out2d.reshape(orig_shape)


if __name__ == "__main__":
    key = jax.random.PRNGKey(0)
    k0, k1, k2, k3 = jax.random.split(key, 4)

    def ref(v):
        vf = v.astype(jnp.float32)
        return (vf * jax.nn.sigmoid(vf)).astype(v.dtype)

    # 1) Main kernel path (lane-aligned, f32).
    x = jax.random.normal(k0, (2, 4, 64, 64), dtype=jnp.float32)
    y = swish(x)
    jax.block_until_ready(y)
    assert y.shape == x.shape and y.dtype == x.dtype
    assert jnp.allclose(y, ref(x), atol=1e-5, rtol=1e-5), "f32 kernel mismatch"

    # 2) Tiny-input fast path (module's canonical small shape).
    xs = jax.random.normal(k1, (2, 4, 16, 16), dtype=jnp.float32)
    ys = swish(xs)
    jax.block_until_ready(ys)
    assert jnp.allclose(ys, ref(xs), atol=1e-5, rtol=1e-5), "fast path mismatch"

    # 3) Ragged (numel % 128 != 0) kernel path.
    xr = jax.random.normal(k2, (129, 131), dtype=jnp.float32)
    yr = swish(xr)
    jax.block_until_ready(yr)
    assert yr.shape == xr.shape
    assert jnp.allclose(yr, ref(xr), atol=1e-5, rtol=1e-5), "ragged path mismatch"

    # 4) bf16 kernel path (exercises the 16-row sublane rounding).
    xb = jax.random.normal(k3, (2, 4, 64, 64), dtype=jnp.bfloat16)
    yb = swish(xb)
    jax.block_until_ready(yb)
    assert yb.dtype == jnp.bfloat16
    assert jnp.allclose(yb.astype(jnp.float32), ref(xb).astype(jnp.float32),
                        atol=2e-2, rtol=2e-2), "bf16 kernel mismatch"

    print("KERNEL_OK")
</pallas_src>

<mosaic_0001>
module attributes {stable_mosaic.version = 11 : i64} {
  func.func @_probe(%arg0: i32, %arg1: memref<8x128xf32, #tpu.memory_space<vmem>>, %arg2: memref<8x128xf32, #tpu.memory_space<vmem>>) attributes {dimension_semantics = [#tpu.dimension_semantics<core_parallel>], iteration_bounds = array<i64: 3>, scalar_prefetch = 0 : i64, scratch_operands = 0 : i64, tpu.core_type = #tpu.core_type<tc>, window_params = [{transform_indices = @transform_0, window_bounds = array<i64: 8, 128>}, {transform_indices = @transform_1, window_bounds = array<i64: 8, 128>}]} {
    %c0 = arith.constant 0 : index
    %c0_0 = arith.constant 0 : index
    %0 = vector.load %arg1[%c0, %c0_0] : memref<8x128xf32, #tpu.memory_space<vmem>>, vector<8x128xf32>
    %c0_1 = arith.constant 0 : index
    %c0_2 = arith.constant 0 : index
    %1 = vector.load %arg2[%c0_1, %c0_2] : memref<8x128xf32, #tpu.memory_space<vmem>>, vector<8x128xf32>
    tpu.vector_store %arg2[%c0_1, %c0_2], %0 {strides = array<i32>} : memref<8x128xf32, #tpu.memory_space<vmem>>, vector<8x128xf32>,
    return
  }
  func.func @transform_0(%arg0: i32) -> (i32, i32) {
    %c0_i32 = arith.constant 0 : i32
    %c0_i32_0 = arith.constant 0 : i32
    return %arg0, %c0_i32 : i32, i32
  }
  func.func @transform_1(%arg0: i32) -> (i32, i32) {
    %c0_i32 = arith.constant 0 : i32
    %c0_i32_0 = arith.constant 0 : i32
    return %arg0, %c0_i32 : i32, i32
  }
}

module attributes {stable_mosaic.version = 11 : i64} {
  func.func @_swish_kernel(%arg0: i32, %arg1: memref<64x128xf32, #tpu.memory_space<vmem>>, %arg2: memref<64x128xf32, #tpu.memory_space<vmem>>) attributes {dimension_semantics = [#tpu.dimension_semantics<parallel>], iteration_bounds = array<i64: 4>, scalar_prefetch = 0 : i64, scratch_operands = 0 : i64, tpu.core_type = #tpu.core_type<tc>, window_params = [{transform_indices = @transform_0, window_bounds = array<i64: 64, 128>}, {transform_indices = @transform_1, window_bounds = array<i64: 64, 128>}]} {
    %c0 = arith.constant 0 : index
    %c0_0 = arith.constant 0 : index
    %0 = vector.load %arg1[%c0, %c0_0] : memref<64x128xf32, #tpu.memory_space<vmem>>, vector<64x128xf32>
    %cst = arith.constant 5.000000e-01 : f32
    %1 = vector.broadcast %cst : f32 to vector<64x128xf32>
    %2 = arith.mulf %1, %0 : vector<64x128xf32>
    %3 = math.tanh %2 : vector<64x128xf32>
    %cst_1 = arith.constant 1.000000e+00 : f32
    %4 = vector.broadcast %cst_1 : f32 to vector<64x128xf32>
    %5 = arith.addf %3, %4 : vector<64x128xf32>
    %cst_2 = arith.constant 5.000000e-01 : f32
    %6 = vector.broadcast %cst_2 : f32 to vector<64x128xf32>
    %7 = arith.mulf %6, %5 : vector<64x128xf32>
    %8 = arith.mulf %0, %7 : vector<64x128xf32>
    %c0_3 = arith.constant 0 : index
    %c0_4 = arith.constant 0 : index
    %9 = vector.load %arg2[%c0_3, %c0_4] : memref<64x128xf32, #tpu.memory_space<vmem>>, vector<64x128xf32>
    tpu.vector_store %arg2[%c0_3, %c0_4], %8 {strides = array<i32>} : memref<64x128xf32, #tpu.memory_space<vmem>>, vector<64x128xf32>,
    return
  }
  func.func @transform_0(%arg0: i32) -> (i32, i32) {
    %c0_i32 = arith.constant 0 : i32
    %c0_i32_0 = arith.constant 0 : i32
    return %arg0, %c0_i32 : i32, i32
  }
  func.func @transform_1(%arg0: i32) -> (i32, i32) {
    %c0_i32 = arith.constant 0 : i32
    %c0_i32_0 = arith.constant 0 : i32
    return %arg0, %c0_i32 : i32, i32
  }
}

</mosaic_0001>

<bundles_post_ra>
// kernel: tpu_custom_call.1
= control target key start
LH: loop header
LB: loop body
LE: loop exit
PB: predicated region body
PF: predicated region fallthrough
CT: control target
= control target key end

     0   :  { %6 = vsyncpa [#allocation3], 0  ;;  %s640_s0 = inlined_call_operand.hbm [shape: f32[256,128], index: 0, kind: input, shape index: {}]   ;;  %s641_s1 = inlined_call_operand.hbm [shape: f32[256,128], index: 1, kind: output, shape index: {}]  }
   0x1   :  { %8 = vsyncpa [#allocation3 + $0x1], 0 }
   0x2   :  { %9 = vsyncpa [#allocation4], 0 }
   0x3   :  { %11 = vsyncpa [#allocation4 + $0x1], 0  ;;  %s476_s6 = smov 0   ;;  %s478_s7 = smov 0  }
   0x4   :  { %s480_s8 = smov 0   ;;  %s482_s9 = smov 0  }
   0x5 LB: > { %s497_s10 = sadd.s32 4294967295, %s458_s9   ;;  %s280_s11 = sadd.s32 4294967294, %s458_s9   ;;  %s458_s9 = sphi %s482_s9, %s653_s9   ;;  %s454_s8 = sphi %s480_s8, %s652_s8   ;;  %s450_s7 = sphi %s478_s7, %s651_s7   ;;  %s446_s6 = sphi %s476_s6, %s650_s6  }
   0x6   : > { %s501_s12 = sadd.s32 1, %s458_s9   ;;  %s24_s13 = sadd.s32 1, %s454_s8 }
   0x7   : > { %s21_s14 = ssub.s32 %s458_s9, %s501_s12  ;;  %p31_p0 = scmp.ne.s32.totalorder %s454_s8, %s450_s7 }
   0x8   : > { %p22_p1 = scmp.eq.s32.totalorder %s21_s14, 0  ;;  %p32_p2 = scmp.eq.s32.totalorder %s458_s9, 0 }
   0x9   : > { %p37_p3 = scmp.ne.s32.totalorder %s450_s7, %s446_s6  ;;  %p38_p4 = scmp.eq.s32.totalorder %s497_s10, 0 }
   0xa   : > { %s513_s15 = scalar_select %p22_p1, %s454_s8, %s24_s13  }
   0xb   : > { %p515_p5 = por %p32_p2, %p31_p0  ;;  %p519_p6 = por %p38_p4, %p37_p3 }
   0xc   : > { %p61_p7 = scmp.eq.s32.totalorder %s497_s10, 3  ;;  %p67_p8 = scmp.eq.s32.totalorder %s280_s11, 3 }
   0xd   : > { %p308_p9 = scmp.lt.s32.totalorder %s458_s9, 4  ;;  %s87_s20 = sand.u32 1, %s454_s8  }
   0xe   : > { %p525_p10 = por %p61_p7, %p31_p0  ;;  %p529_p11 = por %p67_p8, %p37_p3 }
   0xf   : > { %s294_s21 = sshll.u32 %s458_s9, 10  ;;  %s283_s22 = sshll.u32 %s87_s20, 6 }
  0x10   : > { %s645_s18 = scalar_select %p525_p10, 1, 0 }
  0x11   : > { %s646_s19 = scalar_select %p529_p11, 1, 0 }
  0x12   : > { %s538_s25 = scalar_lea.hbm %s640_s0, %s294_s21  ;;  %s91_s26 = scalar_lea.vmem [#allocation2], %s283_s22 }
  0x13   : > { %s98_s27 = sshll.u32 %s91_s26, 4  ;;  %p542_p12 = pnand %p308_p9, %p515_p5  ;;  %s546_s27 = int_to_ptr.vmem [resolvable:$true] %s98_s27 }
  0x14   : > { %s548_s29 = scalar_lea.sflag [#allocation3], %s87_s20  ;;  %s362_s30 = scalar_lea.hbm %s538_s25, 1024 }
  0x15   : > { %p363_p13 = scmp.ne.s32.totalorder %s538_s25, %s362_s30  ;;  %p364_p0 = pneg %p542_p12 }
  0x16   : > { %s367_s4 = scalar_lea.hbm %s640_s0, 4096  ;;  %p368_p3 = scmp.lt.u32.totalorder %s538_s25, %s640_s0 }
  0x17   : > { %p365_p1 = pnand %p364_p0, %p363_p13  ;;  %p369_p4 = scmp.lt.u32.totalorder %s367_s4, %s362_s30 }
  0x18   : > { %p371_p7 = scmp.lt.u32.totalorder %s362_s30, %s538_s25 }
  0x19   : > { %p366_p2 = pneg %p365_p1  ;;  %p370_p5 = por %p369_p4, %p368_p3 }
  0x1b   : > { %p372_p8 = por %p371_p7, %p370_p5 }
  0x1d   : > { %p373_p9 = pnand %p372_p8, %p366_p2 }
  0x1f   : > { %376 = shalt.err (!%p373_p9)
}
  0x20   : > { %s377_s13 = scalar_lea.vmem %s546_s27, 1024  ;;  %s460_s14 = smov [#allocation2]  }
  0x21   : > { %p378_p13 = scmp.ne.s32.totalorder %s546_s27, %s377_s13  ;;  %s382_s16 = sshll.u32 %s460_s14, 4  ;;  %s383_s16 = int_to_ptr.vmem [resolvable:$false] %s382_s16 }
  0x22   : > { %s384_s20 = scalar_lea.vmem %s383_s16, 2048  ;;  %p385_p10 = scmp.lt.s32.totalorder %s546_s27, %s383_s16 }
  0x23   : > { %p380_p1 = pnand %p378_p13, %p364_p0  ;;  %p386_p3 = scmp.lt.s32.totalorder %s384_s20, %s377_s13 }
  0x25   : > { %p381_p11 = pneg %p380_p1  ;;  %p387_p4 = por %p386_p3, %p385_p10 }
  0x27   : > { %p388_p5 = pnand %p387_p4, %p381_p11 }
  0x29   : > { %391 = shalt.err (!%p388_p5)
}
  0x2a   : > { %s461_s21 = smov 128   ;;  %s462_s22 = smov 8  }
  0x2b   : > { %303 = dma.hbm_to_vmem [thread:$0]  (!%p542_p12), %s538_s25, 1024, %s546_s27, %s548_s29, %s461_s21, %s461_s21, %s462_s22  }
  0x2c   : > { %p286_p0 = scmp.ge.s32.totalorder %s458_s9, 1  ;;  %p106_p2 = scmp.lt.s32.totalorder %s458_s9, 5 }
  0x2e   : > { %p107_p7 = pnand %p286_p0, %p106_p2 }
  0x2f   : > { %s579_s23 = sand.u32 (!%p107_p7), 1, %s450_s7  }
  0x30   : > { %110 = sbr.rel (%p107_p7) target bundleno = 98 (0x62), region = 24  ;;  %s287_s24 = sshll.u32 (!%p107_p7), %s579_s23, 6 }
  0x31   : > { %s113_s26 = scalar_lea.sflag (!%p107_p7), [#allocation3], %s579_s23  ;;  %s116_s30 = scalar_lea.vmem (!%p107_p7), [#allocation2], %s287_s24 }
  0x37   : > { %437 = dma.done.wait (%p519_p6), %s113_s26, 1024  }
  0x38   : > { %439 = vsyncadd (%p519_p6), %s113_s26, 4294966272  ;;  %v137_v0 = vld [vmem:[%s116_s30] sm:$0xff]  ;;  %v138_v1 = vld [vmem:[%s116_s30 + $0x8] sm:$0xff]  ;;  %s134_s17 = scalar_lea.vmem [#allocation5], %s287_s24  ;;  %s295_s27 = sshll.u32 %s497_s10, 10 }
  0x39   : > { %v139_v2 = vld [vmem:[%s116_s30 + $0x10] sm:$0xff]  ;;  %v145_v3 = vmul.f32 0.5, %v137_v0  ;;  %v146_v4 = vmul.f32 0.5, %v138_v1  ;;  %v140_v6 = vld [vmem:[%s116_s30 + $0x18] sm:$0xff]  ;;  %v141_v7 = vld [vmem:[%s116_s30 + $0x20] sm:$0xff]  ;;  %s207_s25 = sshll.u32 %s134_s17, 4  ;;  %s597_s2 = scalar_lea.hbm %s641_s1, %s295_s27  ;;  %s592_s25 = int_to_ptr.vmem [resolvable:$true] %s207_s25 }
  0x3a   : > { %v147_v5 = vmul.f32 0.5, %v139_v2  ;;  %v142_v8 = vld [vmem:[%s116_s30 + $0x28] sm:$0xff]  ;;  %v148_v9 = vmul.f32 0.5, %v140_v6  ;;  %v143_v10 = vld [vmem:[%s116_s30 + $0x30] sm:$0xff]  ;;  %v149_v11 = vmul.f32 0.5, %v141_v7  ;;  %v144_v12 = vld [vmem:[%s116_s30 + $0x38] sm:$0xff] }
  0x3b   : > { %346 = vtanh.f32 %v145_v3  ;;  %v150_v13 = vmul.f32 0.5, %v142_v8  ;;  %v151_v14 = vmul.f32 0.5, %v143_v10  ;;  %v152_v15 = vmul.f32 0.5, %v144_v12  ;;  %s194_s10 = scalar_lea.sflag [#allocation4], %s579_s23  ;;  %s392_s3 = scalar_lea.vmem %s592_s25, 1024 }
  0x3c   : > { %348 = vtanh.f32 %v146_v4  ;;  %p393_p6 = scmp.ne.s32.totalorder %s592_s25, %s392_s3  ;;  %p648_p10 = scmp.ne.s32.totalorder %s645_s18, 0 }
  0x3d   : > { %350 = vtanh.f32 %v147_v5  ;;  %s463_s4 = smov [#allocation5]  }
  0x3e   : > { %352 = vtanh.f32 %v148_v9  ;;  %p394_p11 = pnand %p393_p6, %p648_p10  ;;  %s396_s5 = sshll.u32 %s463_s4, 4  ;;  %s397_s5 = int_to_ptr.vmem [resolvable:$false] %s396_s5 }
  0x3f   : > { %354 = vtanh.f32 %v149_v11  ;;  %s398_s11 = scalar_lea.vmem %s397_s5, 2048  ;;  %p399_p8 = scmp.lt.s32.totalorder %s592_s25, %s397_s5 }
  0x40   : > { %356 = vtanh.f32 %v150_v13  ;;  %p395_p12 = pneg %p394_p11  ;;  %p400_p9 = scmp.lt.s32.totalorder %s398_s11, %s392_s3 }
  0x41   : > { %358 = vtanh.f32 %v151_v14 }
  0x42   : > { %360 = vtanh.f32 %v152_v15  ;;  %p401_p13 = por %p400_p9, %p399_p8 }
  0x44   : > { %p402_p1 = pnand %p401_p13, %p395_p12 }
  0x45   : > { %v347_v16 = vpop.eup %346 }
  0x46   : > { %v349_v17 = vpop.eup %348  ;;  %v161_v18 = vadd.f32 1.0, %v347_v16 }
  0x47   : > { %v351_v19 = vpop.eup %350  ;;  %v162_v20 = vadd.f32 1.0, %v349_v17 }
  0x48   : > { %v353_v21 = vpop.eup %352  ;;  %v169_v22 = vmul.f32 0.5, %v161_v18  ;;  %v163_v23 = vadd.f32 1.0, %v351_v19 }
  0x49   : > { %v355_v24 = vpop.eup %354  ;;  %v170_v25 = vmul.f32 0.5, %v162_v20  ;;  %v164_v26 = vadd.f32 1.0, %v353_v21 }
  0x4a   : > { %v357_v27 = vpop.eup %356  ;;  %v177_v28 = vmul.f32 %v169_v22, %v137_v0  ;;  %v171_v29 = vmul.f32 0.5, %v163_v23  ;;  %v165_v30 = vadd.f32 1.0, %v355_v24 }
  0x4b   : > { %v359_v31 = vpop.eup %358  ;;  %v178_v32 = vmul.f32 %v170_v25, %v138_v1  ;;  %v172_v33 = vmul.f32 0.5, %v164_v26  ;;  %v166_v34 = vadd.f32 1.0, %v357_v27 }
  0x4c   : > { %v361_v35 = vpop.eup %360  ;;  %185 = vst [vmem:[%s134_s17] sm:$0xff] %v177_v28  ;;  %v179_v36 = vmul.f32 %v171_v29, %v139_v2  ;;  %v173_v37 = vmul.f32 0.5, %v165_v30  ;;  %v167_v38 = vadd.f32 1.0, %v359_v31 }
  0x4d   : > { %186 = vst [vmem:[%s134_s17 + $0x8] sm:$0xff] %v178_v32  ;;  %v180_v39 = vmul.f32 %v172_v33, %v140_v6  ;;  %v174_v40 = vmul.f32 0.5, %v166_v34  ;;  %v168_v41 = vadd.f32 1.0, %v361_v35 }
  0x4e   : > { %187 = vst [vmem:[%s134_s17 + $0x10] sm:$0xff] %v179_v36  ;;  %v181_v42 = vmul.f32 %v173_v37, %v141_v7  ;;  %v175_v43 = vmul.f32 0.5, %v167_v38 }
  0x4f   : > { %188 = vst [vmem:[%s134_s17 + $0x18] sm:$0xff] %v180_v39  ;;  %v182_v44 = vmul.f32 %v174_v40, %v142_v8  ;;  %v176_v45 = vmul.f32 0.5, %v168_v41 }
  0x50   : > { %189 = vst [vmem:[%s134_s17 + $0x20] sm:$0xff] %v181_v42  ;;  %v183_v46 = vmul.f32 %v175_v43, %v143_v10 }
  0x51   : > { %190 = vst [vmem:[%s134_s17 + $0x28] sm:$0xff] %v182_v44  ;;  %v184_v47 = vmul.f32 %v176_v45, %v144_v12 }
  0x52   : > { %191 = vst [vmem:[%s134_s17 + $0x30] sm:$0xff] %v183_v46 }
  0x53   : > { %192 = vst [vmem:[%s134_s17 + $0x38] sm:$0xff] %v184_v47 }
  0x54   : > { %405 = shalt.err (!%p402_p1)
}
  0x55   : > { %s406_s13 = scalar_lea.hbm %s597_s2, 1024  ;;  %s410_s20 = scalar_lea.hbm %s641_s1, 4096 }
  0x56   : > { %p407_p3 = scmp.ne.s32.totalorder %s597_s2, %s406_s13  ;;  %p411_p0 = scmp.lt.u32.totalorder %s597_s2, %s641_s1 }
  0x57   : > { %p412_p2 = scmp.lt.u32.totalorder %s410_s20, %s406_s13  ;;  %p414_p6 = scmp.lt.u32.totalorder %s406_s13, %s597_s2 }
  0x58   : > { %p408_p4 = pnand %p407_p3, %p648_p10 }
  0x59   : > { %p413_p7 = por %p412_p2, %p411_p0 }
  0x5a   : > { %p409_p5 = pneg %p408_p4 }
  0x5b   : > { %p415_p11 = por %p414_p6, %p413_p7 }
  0x5d   : > { %p416_p12 = pnand %p415_p11, %p409_p5 }
  0x5f   : > { %419 = shalt.err (!%p416_p12)
}
  0x60   : > { %s464_s24 = smov 128   ;;  %s465_s26 = smov 8  }
  0x61   : > { %298 = dma.vmem_to_hbm [thread:$0]  (%p648_p10), %s592_s25, 1024, %s597_s2, %s194_s10, %s464_s24, %s464_s24, %s465_s26  }
  0x62 PF: > { %p309_p8 = scmp.ge.s32.totalorder %s458_s9, 2  ;;  %s222_s30 = sand.u32 1, %s446_s6  }
  0x63   : > { %p649_p9 = scmp.ne.s32.totalorder %s646_s19, 0  ;;  %s223_s17 = scalar_lea.sflag [#allocation4], %s222_s30 }
  0x65   : > { %p305_p13 = pnand %p309_p8, %p649_p9 }
  0x67   : > { %441 = dma.done.wait (!%p305_p13), %s223_s17, 1024  }
  0x68   : > { %443 = vsyncadd (!%p305_p13), %s223_s17, 4294966272  ;;  %p14_p1 = scmp.ge.s32.totalorder %s501_s12, 6   ;;  %s650_s6 = smov %s450_s7 }
  0x69   : > { %s651_s7 = smov %s454_s8  ;;  %s652_s8 = smov %s513_s15 }
  0x6a   : > { %s653_s9 = smov %s501_s12  ;;  %16 = sbr.rel (!%p14_p1) target bundleno = 5 (0x5), region = 69 }
  0x71   :  { %228 = vsyncpa [#allocation3], 1 }
  0x72   :  { %230 = vsyncpa [#allocation3 + $0x1], 1 }
  0x73   :  { %231 = vsyncpa [#allocation4], 1 }
  0x74   :  { %233 = vsyncpa [#allocation4 + $0x1], 1 }

</bundles_post_ra>
